<compile_context>
chip_gen: v7x
topology: tpu7x:2x2x1
jax: 0.10.0
libtpu: 0.0.40
codegen_flags: <defaults>
</compile_context>

<pallas_src>
import functools

import jax
import jax.numpy as jnp
from jax.experimental import pallas as pl
from jax.experimental.pallas import tpu as pltpu


def _value_layer_kernel(x_ref, w_ref, o_ref, *, hidden, matmul_dtype):
    h = hidden
    # x tile: (1, TN), lane-dense.  Cast to f32 in-kernel (no wrapper pass).
    x = x_ref[...].astype(jnp.float32)                          # (1, TN)

    # Static views into the packed weight slab (H, H+5).  Tiny; slicing cost
    # is negligible relative to the (H, TN) work per step.
    w2t = w_ref[:, :h]                                          # (H, H) = W2^T
    w1 = w_ref[:, h + 0:h + 1]                                  # (H, 1)
    b1 = w_ref[:, h + 1:h + 2]                                  # (H, 1)
    b2 = w_ref[:, h + 2:h + 3]                                  # (H, 1)
    w3 = w_ref[:, h + 3:h + 4]                                  # (H, 1)
    b3 = w_ref[0:1, h + 4:h + 5]                                # (1, 1)

    # Layer 1: Linear(1 -> H) + ReLU, transposed: h1[h, n] = w1[h]*x[n] + b1[h].
    # Pure VPU broadcast multiply-add (in_features == 1, so no matmul needed).
    h1 = jnp.maximum(w1 * x + b1, 0.0)                          # (H, TN) f32

    # Layer 2: Linear(H -> H) + ReLU on the MXU: (H,H) @ (H,TN), lane-dense
    # result.  Operands optionally in bf16; accumulation stays f32.
    h2 = jnp.dot(w2t.astype(matmul_dtype), h1.astype(matmul_dtype),
                 preferred_element_type=jnp.float32)            # (H, TN) f32
    h2 = jnp.maximum(h2 + b2, 0.0)

    # Layer 3: Linear(H -> 1), no activation.  A width-1 matmul would occupy
    # the MXU at ~1/128 utilization; use VPU multiply + sublane reduce instead.
    out = jnp.sum(h2 * w3, axis=0, keepdims=True) + b3          # (1, TN)
    o_ref[...] = out.astype(o_ref.dtype)


def _pick_tile(n, preferred, *, max_tile=32768):
    """Lane tile: multiple of 128, <= min(preferred, max_tile), chosen so the
    grid has an even number of steps (>= 2) whenever n > 128, keeping both
    v7x TensorCores busy while staying under the scoped VMEM limit."""
    preferred = max(128, min(int(preferred), int(max_tile)))
    lanes = pl.cdiv(n, 128) * 128
    if lanes <= 128:
        return 128
    steps = pl.cdiv(lanes, preferred)
    if steps < 2:
        steps = 2
    elif steps % 2:
        steps += 1                       # even step count for v7x 2-TC balance
    return max(128, pl.cdiv(lanes // 128, steps) * 128)


def value_layer_forward(x, params, *, tile_n=16384, matmul_dtype=jnp.bfloat16):
    """x: (N,) float.  params: dict of w1,b1,w2,b2,w3,b3 (x @ W layout).
    Returns (N,) float32."""
    n = x.shape[0]
    h = params["w1"].shape[1]

    tile = _pick_tile(n, tile_n)
    grid = (pl.cdiv(n, tile),)           # ragged boundary block handled by Pallas

    # (N,) -> (1, N): N on the lane axis.  Trivial reshape (no HBM pass).
    x2d = x.reshape(1, n)

    # Pack all weights into a single (H, H+5) f32 slab:
    #   cols [0:H) = W2^T, col H = w1, H+1 = b1, H+2 = b2, H+3 = w3, H+4 = b3.
    packed = jnp.concatenate(
        [
            params["w2"].T.astype(jnp.float32),                       # (H, H)
            params["w1"].reshape(h, 1).astype(jnp.float32),           # (H, 1)
            params["b1"].reshape(h, 1).astype(jnp.float32),           # (H, 1)
            params["b2"].reshape(h, 1).astype(jnp.float32),           # (H, 1)
            params["w3"].reshape(h, 1).astype(jnp.float32),           # (H, 1)
            jnp.broadcast_to(params["b3"].reshape(1, 1).astype(jnp.float32),
                             (h, 1)),                                 # (H, 1)
        ],
        axis=1,
    )                                                                 # (H, H+5)

    kernel = functools.partial(_value_layer_kernel, hidden=h,
                               matmul_dtype=matmul_dtype)

    # VMEM footprint at tile=32768, H=32: ~8 MiB of f32 intermediates (+4 MiB
    # bf16 staging), 2 x 128 KiB double-buffered x/out blocks, <10 KiB weights:
    # comfortably under the 32 MiB default scoped VMEM on v5e/v6e/v7x.
    out = pl.pallas_call(
        kernel,
        out_shape=jax.ShapeDtypeStruct((1, n), jnp.float32),
        grid_spec=pltpu.PrefetchScalarGridSpec(
            num_scalar_prefetch=0,
            grid=grid,
            in_specs=[
                pl.BlockSpec((1, tile), lambda i: (0, i)),      # x tile (lane-dense)
                pl.BlockSpec((h, h + 5), lambda i: (0, 0)),     # packed weights
            ],
            out_specs=pl.BlockSpec((1, tile), lambda i: (0, i)),
        ),
        compiler_params=pltpu.CompilerParams(
            dimension_semantics=("parallel",)),
    )(x2d, packed)

    # squeeze: (1, N) -> (N,).  Trivial reshape, no HBM pass, no padding slice.
    return out.reshape(n)


def init_params(key, mlp_layers=(1, 32, 32, 1)):
    """Deterministic synthetic init matching nn.Linear shapes.

    PyTorch Linear(in, out) stores weight (out, in); here we store the
    transposed (in, out) layout so the math is x @ W + b, numerically
    identical to x @ W_torch.T + b.
    """
    assert mlp_layers[0] == 1 and mlp_layers[-1] == 1
    assert len(mlp_layers) == 4, "this kernel is specialized to 3 Linear layers"
    k1, k2, k3, k4, k5, k6 = jax.random.split(key, 6)
    h1, h2 = mlp_layers[1], mlp_layers[2]
    assert h1 == h2, "hidden sizes assumed equal for the (H,H) middle layer"

    def uinit(k, shape, fan_in):
        bound = 1.0 / jnp.sqrt(fan_in)
        return jax.random.uniform(k, shape, jnp.float32, -bound, bound)

    return {
        "w1": uinit(k1, (1, h1), 1),
        "b1": uinit(k2, (1, h1), 1),
        "w2": uinit(k3, (h1, h2), h1),
        "b2": uinit(k4, (1, h2), h1),
        "w3": uinit(k5, (h2, 1), h2),
        "b3": uinit(k6, (1, 1), h2),
    }


def value_layer_ref(x, p):
    """Pure-JAX reference of the PyTorch forward (f32 everywhere)."""
    y = x.astype(jnp.float32)[None, :, None]                   # (1, N, 1)
    y = jnp.maximum(y @ p["w1"] + p["b1"], 0.0)                 # (1, N, H)
    y = jnp.maximum(y @ p["w2"] + p["b2"], 0.0)                 # (1, N, H)
    y = y @ p["w3"] + p["b3"]                                   # (1, N, 1)
    return jnp.squeeze(y)                                       # (N,)


if __name__ == "__main__":
    key = jax.random.PRNGKey(0)
    pkey, xkey1, xkey2 = jax.random.split(key, 3)

    # mlp_layers = [1, 32, 32, 1] (num_channels only affects init in torch)
    params = init_params(pkey, mlp_layers=(1, 32, 32, 1))

    # Case 1: ragged N (exercises the masked boundary block, no pad/slice).
    n1 = 1000
    x1 = jax.random.uniform(xkey1, (n1,), jnp.float32, -1.0, 1.0)
    ref1 = value_layer_ref(x1, params)

    #   (a) bf16 layer-2 matmul (default): deliberate precision/speed trade.
    out1 = jax.block_until_ready(value_layer_forward(x1, params))
    assert out1.shape == (n1,)
    assert jnp.allclose(out1, ref1, atol=2e-2, rtol=2e-2), "mismatch (ragged, bf16)"

    #   (b) f32 layer-2 matmul: bit-tight check of the kernel math.
    out1_f32 = jax.block_until_ready(
        value_layer_forward(x1, params, matmul_dtype=jnp.float32))
    assert jnp.allclose(out1_f32, ref1, atol=1e-5, rtol=1e-5), "mismatch (ragged, f32)"

    # Case 2: N a multiple of the lane tile (no masked boundary block).
    n2 = 256
    x2 = jax.random.uniform(xkey2, (n2,), jnp.float32, -1.0, 1.0)
    ref2 = value_layer_ref(x2, params)
    out2 = jax.block_until_ready(
        value_layer_forward(x2, params, matmul_dtype=jnp.float32))
    assert out2.shape == (n2,)
    assert jnp.allclose(out2, ref2, atol=1e-5, rtol=1e-5), "mismatch (aligned, f32)"

    print("KERNEL_OK")
</pallas_src>

<mosaic_0001>
module attributes {stable_mosaic.version = 11 : i64} {
  func.func @_value_layer_kernel(%arg0: i32, %arg1: memref<1x512xf32, #tpu.memory_space<vmem>>, %arg2: memref<32x37xf32, #tpu.memory_space<vmem>>, %arg3: memref<1x512xf32, #tpu.memory_space<vmem>>) attributes {dimension_semantics = [#tpu.dimension_semantics<parallel>], iteration_bounds = array<i64: 2>, scalar_prefetch = 0 : i64, scratch_operands = 0 : i64, tpu.core_type = #tpu.core_type<tc>, window_params = [{transform_indices = @transform_0, window_bounds = array<i64: 1, 512>}, {pipeline_mode = #tpu.pipeline_mode<synchronous>, transform_indices = @transform_1, window_bounds = array<i64: 32, 37>}, {transform_indices = @transform_2, window_bounds = array<i64: 1, 512>}]} {
    %c0 = arith.constant 0 : index
    %c0_0 = arith.constant 0 : index
    %0 = vector.load %arg1[%c0, %c0_0] : memref<1x512xf32, #tpu.memory_space<vmem>>, vector<1x512xf32>
    %c0_1 = arith.constant 0 : index
    %c0_2 = arith.constant 0 : index
    %1 = vector.load %arg2[%c0_1, %c0_2] : memref<32x37xf32, #tpu.memory_space<vmem>>, vector<32x32xf32>
    %c0_3 = arith.constant 0 : index
    %c32 = arith.constant 32 : index
    %2 = vector.load %arg2[%c0_3, %c32] : memref<32x37xf32, #tpu.memory_space<vmem>>, vector<32x1xf32>
    %c0_4 = arith.constant 0 : index
    %c33 = arith.constant 33 : index
    %3 = vector.load %arg2[%c0_4, %c33] : memref<32x37xf32, #tpu.memory_space<vmem>>, vector<32x1xf32>
    %c0_5 = arith.constant 0 : index
    %c34 = arith.constant 34 : index
    %4 = vector.load %arg2[%c0_5, %c34] : memref<32x37xf32, #tpu.memory_space<vmem>>, vector<32x1xf32>
    %c0_6 = arith.constant 0 : index
    %c35 = arith.constant 35 : index
    %5 = vector.load %arg2[%c0_6, %c35] : memref<32x37xf32, #tpu.memory_space<vmem>>, vector<32x1xf32>
    %c0_7 = arith.constant 0 : index
    %c36 = arith.constant 36 : index
    %6 = vector.load %arg2[%c0_7, %c36] : memref<32x37xf32, #tpu.memory_space<vmem>>, vector<1x1xf32>
    %7 = vector.broadcast %2 : vector<32x1xf32> to vector<32x512xf32>
    %8 = vector.broadcast %0 : vector<1x512xf32> to vector<32x512xf32>
    %9 = arith.mulf %7, %8 : vector<32x512xf32>
    %10 = vector.broadcast %3 : vector<32x1xf32> to vector<32x512xf32>
    %11 = arith.addf %9, %10 : vector<32x512xf32>
    %cst = arith.constant 0.000000e+00 : f32
    %12 = vector.broadcast %cst : f32 to vector<32x512xf32>
    %13 = arith.maximumf %11, %12 : vector<32x512xf32>
    %14 = arith.truncf %1 : vector<32x32xf32> to vector<32x32xbf16>
    %15 = arith.truncf %13 : vector<32x512xf32> to vector<32x512xbf16>
    %cst_8 = arith.constant dense<0.000000e+00> : vector<32x512xf32>
    %16 = tpu.matmul %14, %15, %cst_8 {dimension_numbers = #tpu.dot_dimension_numbers<[1], [0], [0], [1], [0, 0, 1, 1], [], []>} : vector<32x32xbf16>, vector<32x512xbf16>, vector<32x512xf32> -> vector<32x512xf32>
    %17 = vector.broadcast %4 : vector<32x1xf32> to vector<32x512xf32>
    %18 = arith.addf %16, %17 : vector<32x512xf32>
    %cst_9 = arith.constant 0.000000e+00 : f32
    %19 = vector.broadcast %cst_9 : f32 to vector<32x512xf32>
    %20 = arith.maximumf %18, %19 : vector<32x512xf32>
    %21 = vector.broadcast %5 : vector<32x1xf32> to vector<32x512xf32>
    %22 = arith.mulf %20, %21 : vector<32x512xf32>
    %cst_10 = arith.constant dense<0.000000e+00> : vector<512xf32>
    %23 = vector.multi_reduction <add>, %22, %cst_10 [0] : vector<32x512xf32> to vector<512xf32>
    %24 = vector.shape_cast %23 : vector<512xf32> to vector<1x512xf32>
    %25 = vector.broadcast %6 : vector<1x1xf32> to vector<1x512xf32>
    %26 = arith.addf %24, %25 : vector<1x512xf32>
    %c0_11 = arith.constant 0 : index
    %c0_12 = arith.constant 0 : index
    %27 = vector.load %arg3[%c0_11, %c0_12] : memref<1x512xf32, #tpu.memory_space<vmem>>, vector<1x512xf32>
    tpu.vector_store %arg3[%c0_11, %c0_12], %26 {strides = array<i32>} : memref<1x512xf32, #tpu.memory_space<vmem>>, vector<1x512xf32>,
    return
  }
  func.func @transform_0(%arg0: i32) -> (i32, i32) {
    %c0_i32 = arith.constant 0 : i32
    %c0_i32_0 = arith.constant 0 : i32
    return %c0_i32, %arg0 : i32, i32
  }
  func.func @transform_1(%arg0: i32) -> (i32, i32) {
    %c0_i32 = arith.constant 0 : i32
    %c0_i32_0 = arith.constant 0 : i32
    %c0_i32_1 = arith.constant 0 : i32
    return %c0_i32, %c0_i32_0 : i32, i32
  }
  func.func @transform_2(%arg0: i32) -> (i32, i32) {
    %c0_i32 = arith.constant 0 : i32
    %c0_i32_0 = arith.constant 0 : i32
    return %c0_i32, %arg0 : i32, i32
  }
}

</mosaic_0001>

<bundles_post_ra>
// kernel: tpu_custom_call.1
= control target key start
LH: loop header
LB: loop body
LE: loop exit
PB: predicated region body
PF: predicated region fallthrough
CT: control target
= control target key end

     0   :  { %7 = vsyncpa [#allocation3], 0  ;;  %s1130_s0 = inlined_call_operand.hbm [shape: f32[1,1000], index: 0, kind: input, shape index: {}]   ;;  %s1131_s1 = inlined_call_operand.hbm [shape: f32[32,37], index: 1, kind: input, shape index: {}]   ;;  %s1132_s2 = inlined_call_operand.hbm [shape: f32[1,1000], index: 2, kind: output, shape index: {}]  }
   0x1   :  { %9 = vsyncpa [#allocation3 + $0x1], 0 }
   0x2   :  { %10 = vsyncpa [#allocation6], 0 }
   0x3   :  { %11 = vsyncpa [#allocation4], 0 }
   0x4   :  { %13 = vsyncpa [#allocation4 + $0x1], 0  ;;  %s906_s9 = smov 0   ;;  %s908_s10 = smov 0  }
   0x5   :  { %s910_s11 = smov 0   ;;  %s912_s12 = smov 0  }
   0x6 LB: > { %s927_s13 = sadd.s32 4294967295, %s877_s12   ;;  %s650_s14 = sadd.s32 4294967294, %s877_s12   ;;  %s877_s12 = sphi %s912_s12, %s1152_s12   ;;  %s873_s11 = sphi %s910_s11, %s1151_s11   ;;  %s869_s10 = sphi %s908_s10, %s1150_s10   ;;  %s865_s9 = sphi %s906_s9, %s1149_s9  }
   0x7   : > { %p39_p0 = scmp.ne.s32.totalorder %s869_s10, %s865_s9  ;;  %p1133_p1 = scmp.eq.s32.totalorder %s927_s13, 0 }
   0x8   : > { %p90_p3 = scmp.eq.s32.totalorder %s650_s14, 1  ;;  %p651_p5 = scmp.ge.s32.totalorder %s877_s12, 1 }
   0x9   : > { %p936_p4 = por %p1133_p1, %p39_p0  ;;  %p97_p7 = scmp.lt.s32.totalorder %s877_s12, 3 }
   0xa   : > { %p941_p6 = por %p90_p3, %p39_p0  ;;  %s879_s18 = smov [#allocation5]  }
   0xb   : > { %s1136_s15 = scalar_select %p936_p4, 1, 0 }
   0xc   : > { %s1137_s16 = scalar_select %p941_p6, 1, 0 }
   0xd   : > { %p946_p8 = pnand %p651_p5, %p97_p7  ;;  %s109_s19 = sshll.u32 %s879_s18, 4  ;;  %s950_s19 = int_to_ptr.vmem [resolvable:$true] %s109_s19 }
   0xe   : > { %s962_s21 = sadd.s32 1, %s877_s12   ;;  %s26_s22 = sadd.s32 1, %s873_s11 }
   0xf   : > { %s1138_s17 = scalar_select %p946_p8, 1, 0 }
  0x10   : > { %p680_p9 = pneg %p946_p8  ;;  %s23_s23 = ssub.s32 %s877_s12, %s962_s21 }
  0x11   : > { %s749_s26 = scalar_lea.hbm %s1131_s1, 512 }
  0x12   : > { %p957_p11 = pnand %p680_p9, %p1133_p1  ;;  %p750_p12 = scmp.ne.s32.totalorder %s1131_s1, %s749_s26 }
  0x13   : > { %p756_p5 = scmp.lt.u32.totalorder %s749_s26, %s1131_s1 }
  0x14   : > { %p751_p13 = pneg %p957_p11 }
  0x16   : > { %p752_p0 = pnand %p751_p13, %p750_p12 }
  0x18   : > { %p753_p3 = pneg %p752_p0 }
  0x1a   : > { %p758_p7 = pnand %p756_p5, %p753_p3 }
  0x1c   : > { %761 = shalt.err (!%p758_p7)
}
  0x1d   : > { %s762_s3 = scalar_lea.vmem %s950_s19, 512  ;;  %p770_p2 = scmp.lt.s32.totalorder %s950_s19, %s950_s19 }
  0x1e   : > { %p763_p9 = scmp.ne.s32.totalorder %s950_s19, %s762_s3  ;;  %p771_p6 = scmp.lt.s32.totalorder %s762_s3, %s762_s3 }
  0x20   : > { %p765_p10 = pnand %p763_p9, %p751_p13  ;;  %p772_p4 = por %p771_p6, %p770_p2 }
  0x22   : > { %p766_p1 = pneg %p765_p10 }
  0x24   : > { %p773_p8 = pnand %p772_p4, %p766_p1 }
  0x26   : > { %776 = shalt.err (!%p773_p8)
}
  0x27   : > { %s880_s4 = smov 128   ;;  %s881_s5 = smov 8  }
  0x28   : > { %683 = dma.hbm_to_vmem [thread:$0]  (!%p957_p11), %s1131_s1, 512, %s950_s19, [#allocation6], %s880_s4, %s880_s4, %s881_s5  }
  0x29   : > { %p24_p2 = scmp.eq.s32.totalorder %s23_s23, 0  ;;  %p33_p1 = scmp.ne.s32.totalorder %s873_s11, %s869_s10 }
  0x2a   : > { %p34_p4 = scmp.eq.s32.totalorder %s877_s12, 0  ;;  %p693_p6 = scmp.lt.s32.totalorder %s877_s12, 2 }
  0x2b   : > { %s993_s8 = scalar_select %p24_p2, %s873_s11, %s26_s22  }
  0x2c   : > { %p35_p8 = por %p34_p4, %p33_p1  ;;  %p1140_p10 = scmp.eq.s32.totalorder %s927_s13, 1 }
  0x2d   : > { %s123_s18 = sand.u32 1, %s873_s11   ;;  %s670_s24 = sshll.u32 %s877_s12, 6 }
  0x2e   : > { %p997_p12 = por %p1140_p10, %p33_p1  ;;  %s654_s25 = sshll.u32 %s123_s18, 2 }
  0x2f   : > { %s1006_s27 = scalar_lea.hbm %s1130_s0, %s670_s24  ;;  %s127_s19 = scalar_lea.vmem [#allocation2], %s654_s25 }
  0x30   : > { %s135_s22 = sshll.u32 %s127_s19, 4  ;;  %p1008_p11 = pnand %p693_p6, %p35_p8  ;;  %s1012_s22 = int_to_ptr.vmem [resolvable:$true] %s135_s22 }
  0x31   : > { %s124_s28 = scalar_lea.sflag [#allocation3], %s123_s18  ;;  %s777_s29 = scalar_lea.hbm %s1006_s27, 64 }
  0x32   : > { %p778_p13 = scmp.ne.s32.totalorder %s1006_s27, %s777_s29  ;;  %p779_p0 = pneg %p1008_p11 }
  0x33   : > { %s782_s4 = scalar_lea.hbm %s1130_s0, 128  ;;  %p783_p7 = scmp.lt.u32.totalorder %s1006_s27, %s1130_s0 }
  0x34   : > { %p780_p3 = pnand %p779_p0, %p778_p13  ;;  %p784_p9 = scmp.lt.u32.totalorder %s782_s4, %s777_s29 }
  0x35   : > { %p786_p1 = scmp.lt.u32.totalorder %s777_s29, %s1006_s27 }
  0x36   : > { %p781_p5 = pneg %p780_p3  ;;  %p785_p2 = por %p784_p9, %p783_p7 }
  0x38   : > { %p787_p4 = por %p786_p1, %p785_p2 }
  0x3a   : > { %p788_p6 = pnand %p787_p4, %p781_p5 }
  0x3c   : > { %791 = shalt.err (!%p788_p6)
}
  0x3d   : > { %s792_s7 = scalar_lea.vmem %s1012_s22, 64  ;;  %s882_s18 = smov [#allocation2]  }
  0x3e   : > { %p793_p8 = scmp.ne.s32.totalorder %s1012_s22, %s792_s7  ;;  %s797_s24 = sshll.u32 %s882_s18, 4  ;;  %s798_s24 = int_to_ptr.vmem [resolvable:$false] %s797_s24 }
  0x3f   : > { %s799_s25 = scalar_lea.vmem %s798_s24, 128  ;;  %p800_p3 = scmp.lt.s32.totalorder %s1012_s22, %s798_s24 }
  0x40   : > { %p795_p10 = pnand %p793_p8, %p779_p0  ;;  %p801_p7 = scmp.lt.s32.totalorder %s799_s25, %s792_s7 }
  0x42   : > { %p796_p13 = pneg %p795_p10  ;;  %p802_p9 = por %p801_p7, %p800_p3 }
  0x44   : > { %p803_p2 = pnand %p802_p9, %p796_p13 }
  0x46   : > { %806 = shalt.err (!%p803_p2)
}
  0x47   : > { %687 = dma.hbm_to_vmem [thread:$0]  (!%p1008_p11), %s1006_s27, 64, %s1012_s22, %s124_s28  }
  0x48   : > { %p1143_p5 = scmp.ne.s32.totalorder %s1138_s17, 0 }
  0x49   : > { %s1042_s20 = sand.u32 (!%p1143_p5), 1, %s869_s10   ;;  %p1144_p0 = scmp.ne.s32.totalorder (!%p1143_p5), %s1136_s15, 0 }
  0x4a   : > { %144 = sbr.rel (%p1143_p5) target bundleno = 506 (0x1fa), region = 28  ;;  %s658_s26 = sshll.u32 (!%p1143_p5), %s1042_s20, 2 }
  0x4b   : > { %s147_s19 = scalar_lea.sflag (!%p1143_p5), [#allocation3], %s1042_s20  ;;  %s1048_s29 = scalar_lea.vmem (!%p1143_p5), [#allocation2], %s658_s26 }
  0x51   : > { %852 = dma.done.wait (%p1144_p0), %s147_s19, 64  }
  0x52   : > { %854 = vsyncadd (%p1144_p0), %s147_s19, 4294967232  ;;  %p1145_p11 = scmp.eq.s32.totalorder %s927_s13, 0 }
  0x54   : > { %856 = dma.done.wait (%p1145_p11), [#allocation6], 512   ;;  %p1146_p1 = pmov %p1145_p11 }
  0x55   : > { %v883_v0 = vmov 33   ;;  %v884_v1 = vmov 32   ;;  %v179_v2 = vld [vmem:[#allocation5] sm:$0xff]  ;;  %v180_v3 = vld [vmem:[#allocation5 + $0x8] sm:$0xff]  ;;  %v181_v4 = vld [vmem:[#allocation5 + $0x10] sm:$0xff]  ;;  %v885_v7 = vmov 0   ;;  %v205_v13 = vlaneseq }
  0x56   : > { %858 = vsyncadd (%p1146_p1), [#allocation6], 4294966784  ;;  %739 = vset.pattern.permute.xlu1 %v883_v0  ;;  %738 = vset.pattern.permute.xlu0 %v884_v1  ;;  %v182_v5 = vld [vmem:[#allocation5 + $0x18] sm:$0xff]  ;;  %v1058_v6 = vpack.c.bf16 %v180_v3, %v179_v2  ;;  %v886_v9 = vmov 34   ;;  %v887_v10 = vmov 35   ;;  %v888_v11 = vmov 36  }
  0x57   : > { %242 = vperm.xlu1 %739, %v179_v2   ;;  %186 = vperm.xlu0 %738, %v179_v2   ;;  %v1062_v8 = vpack.c.bf16 %v182_v5, %v181_v4  ;;  %v183_v12 = vld [vmem:[#allocation5] sm:$0x1]  ;;  %v1065_v14 = vshrl.u32 %v205_v13, 7  ;;  %v178_v19 = vld [vmem:[%s1048_s29] sm:$0xf]  ;;  %vm315_vm0 = vcmask 261120  }
  0x58   : > { %354 = vmatprep.mubr.bf16.mxu0 %v885_v7  ;;  %407 = vmatprep.mubr.bf16.mxu1 %v885_v7  ;;  %s671_s15 = sshll.u32 %s927_s13, 6  ;;  %s174_s17 = scalar_lea.vmem [#allocation7], %s658_s26  ;;  %vm552_vm1 = vcmp.lt.s32.totalorder %v205_v13, 512 }
  0x59   : > { %v207_v15 = vsub.s32 0, %v1065_v14  ;;  %v215_v16 = vsub.s32 2, %v1065_v14  ;;  %v211_v17 = vsub.s32 1, %v1065_v14  ;;  %v219_v18 = vsub.s32 3, %v1065_v14  ;;  %s570_s27 = sshll.u32 %s174_s17, 4  ;;  %s1086_s28 = scalar_lea.hbm %s1132_s2, %s671_s15  ;;  %s1088_s27 = int_to_ptr.vmem [resolvable:$true] %s570_s27 }
  0x5a   : > { %s556_s30 = scalar_lea.sflag [#allocation4], %s1042_s20  ;;  %s807_s13 = scalar_lea.vmem %s1088_s27, 64 }
  0x5b   : > { %246 = vperm.xlu1 %739, %v180_v3   ;;  %191 = vperm.xlu0 %738, %v180_v3   ;;  %v208_v20 = vrot.slane %v178_v19, %v207_v15  ;;  %v216_v21 = vrot.slane %v178_v19, %v215_v16  ;;  %v212_v22 = vrot.slane %v178_v19, %v211_v17  ;;  %p808_p4 = scmp.ne.s32.totalorder %s1088_s27, %s807_s13  ;;  %s890_s3 = smov [#allocation7]  }
  0x5c   : > { %v220_v23 = vrot.slane %v178_v19, %v219_v18  ;;  %s811_s4 = sshll.u32 %s890_s3, 4  ;;  %s812_s4 = int_to_ptr.vmem [resolvable:$false] %s811_s4 }
  0x5d   : > { %p809_p6 = pnand %p808_p4, %p997_p12  ;;  %s813_s5 = scalar_lea.vmem %s812_s4, 128 }
  0x5e   : > { %p814_p10 = scmp.lt.s32.totalorder %s1088_s27, %s812_s4  ;;  %p815_p13 = scmp.lt.s32.totalorder %s813_s5, %s807_s13 }
  0x5f   : > { %740 = vset.pattern.permute.xlu1 %v884_v1  ;;  %196 = vperm.xlu0 %738, %v181_v4   ;;  %p810_p8 = pneg %p809_p6 }
  0x60   : > { %201 = vperm.xlu1 %740, %v182_v5   ;;  %p816_p3 = por %p815_p13, %p814_p10 }
  0x62   : > { %p817_p7 = pnand %p816_p3, %p810_p8 }
  0x63   : > { %741 = vset.pattern.permute.xlu0 %v883_v0 }
  0x64   : > { %742 = vset.pattern.permute.xlu1 %v883_v0  ;;  %250 = vperm.xlu0 %741, %v181_v4  }
  0x65   : > { %254 = vperm.xlu1 %742, %v182_v5  }
  0x68   : > { %744 = vset.pattern.permute.xlu0 %v886_v9 }
  0x69   : > { %743 = vset.pattern.permute.xlu1 %v886_v9  ;;  %304 = vperm.xlu0 %744, %v180_v3  }
  0x6a   : > { %300 = vperm.xlu1 %743, %v179_v2  }
  0x6d   : > { %745 = vset.pattern.permute.xlu0 %v887_v10 }
  0x6e   : > { %308 = vperm.xlu1 %743, %v181_v4   ;;  %445 = vperm.xlu0 %745, %v179_v2  }
  0x72   : > { %312 = vperm.xlu1 %743, %v182_v5   ;;  %457 = vperm.xlu0 %745, %v182_v5  }
  0x76   : > { %746 = vset.pattern.permute.xlu1 %v887_v10  ;;  %748 = vset.pattern.permute.xlu0 %v888_v11 }
  0x77   : > { %449 = vperm.xlu1 %746, %v180_v3  }
  0x7b   : > { %453 = vperm.xlu1 %746, %v181_v4  }
  0x7f   : > { %747 = vset.pattern.permute.xlu1 %v888_v11 }
  0x80   : > { %514 = vperm.xlu1 %747, %v183_v12  }
  0xd6   : > { %v243_v24 = vpop.permute.xlu1 %242  ;;  %v187_v25 = vpop.permute.xlu0 %186 }
  0xd7   : > { %v225_v26 = vmul.f32 %v208_v20, %v187_v25  ;;  %v227_v27 = vmul.f32 %v216_v21, %v187_v25  ;;  %v226_v28 = vmul.f32 %v212_v22, %v187_v25  ;;  %v228_v29 = vmul.f32 %v220_v23, %v187_v25 }
  0xd9   : > { %v258_v32 = vadd.f32 %v243_v24, %v226_v28  ;;  %v260_v33 = vadd.f32 %v243_v24, %v228_v29  ;;  %v257_v34 = vadd.f32 %v243_v24, %v225_v26  ;;  %v259_v38 = vadd.f32 %v243_v24, %v227_v27 }
  0xda   : > { %v247_v30 = vpop.permute.xlu1 %246  ;;  %v192_v31 = vpop.permute.xlu0 %191 }
  0xdb   : > { %v229_v35 = vmul.f32 %v208_v20, %v192_v31  ;;  %v231_v36 = vmul.f32 %v216_v21, %v192_v31  ;;  %v230_v37 = vmul.f32 %v212_v22, %v192_v31  ;;  %v232_v39 = vmul.f32 %v220_v23, %v192_v31 }
  0xdc   : > { %v274_v46 = vmax.f32 %v258_v32, 0.0  ;;  %v276_v47 = vmax.f32 %v260_v33, 0.0  ;;  %v273_v48 = vmax.f32 %v257_v34, 0.0  ;;  %v275_v49 = vmax.f32 %v259_v38, 0.0 }
  0xdd   : > { %v262_v40 = vadd.f32 %v247_v30, %v230_v37  ;;  %v261_v41 = vadd.f32 %v247_v30, %v229_v35  ;;  %v263_v42 = vadd.f32 %v247_v30, %v231_v36  ;;  %v264_v44 = vadd.f32 %v247_v30, %v232_v39 }
  0xde   : > { %v197_v43 = vpop.permute.xlu0 %196 }
  0xdf   : > { %v202_v45 = vpop.permute.xlu1 %201  ;;  %v233_v50 = vmul.f32 %v208_v20, %v197_v43  ;;  %v234_v51 = vmul.f32 %v212_v22, %v197_v43  ;;  %v235_v52 = vmul.f32 %v216_v21, %v197_v43  ;;  %v236_v53 = vmul.f32 %v220_v23, %v197_v43 }
  0xe0   : > { %v278_v54 = vmax.f32 %v262_v40, 0.0  ;;  %v280_v55 = vmax.f32 %v264_v44, 0.0  ;;  %v277_v56 = vmax.f32 %v261_v41, 0.0  ;;  %v279_v57 = vmax.f32 %v263_v42, 0.0 }
  0xe1   : > { %v237_v58 = vmul.f32 %v208_v20, %v202_v45  ;;  %v238_v59 = vmul.f32 %v212_v22, %v202_v45  ;;  %v239_v60 = vmul.f32 %v216_v21, %v202_v45  ;;  %v240_v61 = vmul.f32 %v220_v23, %v202_v45 }
  0xe2   : > { %v292_v63 = vpack.c.bf16 %v278_v54, %v274_v46  ;;  %v294_v0 = vpack.c.bf16 %v280_v55, %v276_v47  ;;  %v291_v1 = vpack.c.bf16 %v277_v56, %v273_v48  ;;  %v293_v2 = vpack.c.bf16 %v279_v57, %v275_v49 }
  0xe3   : > { %v251_v62 = vpop.permute.xlu0 %250 }
  0xe4   : > { %v265_v3 = vadd.f32 %v251_v62, %v233_v50  ;;  %v266_v4 = vadd.f32 %v251_v62, %v234_v51  ;;  %v267_v5 = vadd.f32 %v251_v62, %v235_v52  ;;  %v268_v9 = vadd.f32 %v251_v62, %v236_v53  ;;  %v255_v10 = vpop.permute.xlu1 %254  ;;  %322 = vmatprep.subr.bf16.mxu0 %v292_v63 }
  0xe5   : > { %375 = vmatprep.subr.bf16.mxu1 %v294_v0  ;;  %v269_v11 = vadd.f32 %v255_v10, %v237_v58  ;;  %v270_v12 = vadd.f32 %v255_v10, %v238_v59  ;;  %v271_v15 = vadd.f32 %v255_v10, %v239_v60  ;;  %v272_v16 = vadd.f32 %v255_v10, %v240_v61 }
  0xe6   : > { %323 = vmatpush1.bf16.msra.mxu0 %v291_v1  ;;  %376 = vmatpush1.bf16.msra.mxu1 %v293_v2  ;;  %v282_v17 = vmax.f32 %v266_v4, 0.0  ;;  %v284_v18 = vmax.f32 %v268_v9, 0.0  ;;  %v281_v19 = vmax.f32 %v265_v3, 0.0  ;;  %v283_v22 = vmax.f32 %v267_v5, 0.0 }
  0xe7   : > { %v286_v20 = vmax.f32 %v270_v12, 0.0  ;;  %v285_v21 = vmax.f32 %v269_v11, 0.0  ;;  %v287_v23 = vmax.f32 %v271_v15, 0.0  ;;  %v288_v24 = vmax.f32 %v272_v16, 0.0 }
  0xe8   : > { %v305_v31 = vpop.permute.xlu0 %304 }
  0xe9   : > { %v296_v25 = vpack.c.bf16 %v286_v20, %v282_v17  ;;  %v295_v26 = vpack.c.bf16 %v285_v21, %v281_v19  ;;  %v297_v27 = vpack.c.bf16 %v287_v23, %v283_v22  ;;  %v298_v28 = vpack.c.bf16 %v288_v24, %v284_v18  ;;  %v301_v29 = vpop.permute.xlu1 %300 }
  0xeb   : > { %324 = vmatprep.subr.bf16.mxu0 %v296_v25  ;;  %377 = vmatprep.subr.bf16.mxu1 %v298_v28 }
  0xec   : > { %325 = vmatpush1.bf16.msra.mxu0 %v295_v26  ;;  %378 = vmatpush1.bf16.msra.mxu1 %v297_v27 }
  0xed   : > { %v309_v30 = vpop.permute.xlu1 %308  ;;  %v446_v34 = vpop.permute.xlu0 %445 }
  0xef   : > { %661 = vmatmul.mubr.msk.bf16.vlgmr.msra.gmra.mrb[0].mxu0 %vm315_vm0, %v1058_v6  ;;  %663 = vmatmul.mubr.msk.bf16.vlgmr.msra.gmra.mrb[0].mxu1 %vm315_vm0, %v1058_v6 }
  0xf0   : > { %364 = vmatprep.mubr.bf16.mxu0 %v885_v7  ;;  %417 = vmatprep.mubr.bf16.mxu1 %v885_v7 }
  0xf1   : > { %v313_v32 = vpop.permute.xlu1 %312 }
  0xf6   : > { %v450_v49 = vpop.permute.xlu1 %449 }
  0xf7   : > { %662 = vmatmul.mubr.msk.bf16.gmra.mrb[4].mxu0 %vm315_vm0, %v1062_v8  ;;  %664 = vmatmul.mubr.msk.bf16.gmra.mrb[4].mxu1 %vm315_vm0, %v1062_v8 }
  0xfa   : > { %v454_v23 = vpop.permute.xlu1 %453 }
 0x1c2   : > { %v356_v33 = vpop.f32.mrb[0].mxu0  ;;  %v409_v36 = vpop.f32.mrb[0].mxu1 }
 0x1c3   : > { %v357_v35 = vadd.f32 %v356_v33, %v301_v29  ;;  %v358_v37 = vpop.f32.mrb[1].mxu0  ;;  %v410_v38 = vadd.f32 %v409_v36, %v301_v29  ;;  %v411_v6 = vpop.f32.mrb[1].mxu1 }
 0x1c4   : > { %v359_v39 = vadd.f32 %v358_v37, %v301_v29  ;;  %v360_v40 = vpop.f32.mrb[2].mxu0  ;;  %v412_v42 = vadd.f32 %v411_v6, %v301_v29  ;;  %v413_v43 = vpop.f32.mrb[2].mxu1 }
 0x1c5   : > { %v428_v41 = vmax.f32 %v357_v35, 0.0  ;;  %v361_v7 = vadd.f32 %v360_v40, %v305_v31  ;;  %v362_v44 = vpop.f32.mrb[3].mxu0  ;;  %v430_v45 = vmax.f32 %v410_v38, 0.0  ;;  %v414_v46 = vadd.f32 %v413_v43, %v305_v31  ;;  %v415_v48 = vpop.f32.mrb[3].mxu1 }
 0x1c6   : > { %v429_v8 = vmax.f32 %v359_v39, 0.0  ;;  %v363_v47 = vadd.f32 %v362_v44, %v305_v31  ;;  %v431_v50 = vmax.f32 %v412_v42, 0.0  ;;  %v416_v52 = vadd.f32 %v415_v48, %v305_v31  ;;  %v458_v37 = vpop.permute.xlu0 %457 }
 0x1c7   : > { %v432_v51 = vmax.f32 %v361_v7, 0.0  ;;  %v434_v53 = vmax.f32 %v414_v46, 0.0  ;;  %v460_v56 = vmul.f32 %v446_v34, %v428_v41  ;;  %v462_v59 = vmul.f32 %v446_v34, %v430_v45 }
 0x1c8   : > { %v433_v54 = vmax.f32 %v363_v47, 0.0  ;;  %v435_v55 = vmax.f32 %v416_v52, 0.0  ;;  %v461_v58 = vmul.f32 %v446_v34, %v429_v8  ;;  %v463_v63 = vmul.f32 %v446_v34, %v431_v50 }
 0x1c9   : > { %v464_v57 = vmul.f32 %v450_v49, %v432_v51  ;;  %v466_v61 = vmul.f32 %v450_v49, %v434_v53 }
 0x1ca   : > { %v465_v60 = vmul.f32 %v450_v49, %v433_v54  ;;  %v366_v62 = vpop.f32.mrb[4].mxu0  ;;  %v467_v0 = vmul.f32 %v450_v49, %v435_v55  ;;  %v419_v3 = vpop.f32.mrb[4].mxu1 }
 0x1cb   : > { %v476_v1 = vadd.f32 %v464_v57, %v460_v56  ;;  %v367_v2 = vadd.f32 %v366_v62, %v309_v30  ;;  %v368_v4 = vpop.f32.mrb[5].mxu0  ;;  %v494_v5 = vadd.f32 %v466_v61, %v462_v59  ;;  %v420_v9 = vadd.f32 %v419_v3, %v309_v30  ;;  %v421_v12 = vpop.f32.mrb[5].mxu1 }
 0x1cc   : > { %v369_v10 = vadd.f32 %v368_v4, %v309_v30  ;;  %v485_v11 = vadd.f32 %v465_v60, %v461_v58  ;;  %v370_v15 = vpop.f32.mrb[6].mxu0  ;;  %v422_v17 = vadd.f32 %v421_v12, %v309_v30  ;;  %v503_v18 = vadd.f32 %v467_v0, %v463_v63  ;;  %v423_v20 = vpop.f32.mrb[6].mxu1 }
 0x1cd   : > { %v436_v16 = vmax.f32 %v367_v2, 0.0  ;;  %v371_v19 = vadd.f32 %v370_v15, %v313_v32  ;;  %v372_v21 = vpop.f32.mrb[7].mxu0  ;;  %v438_v22 = vmax.f32 %v420_v9, 0.0  ;;  %v424_v25 = vadd.f32 %v423_v20, %v313_v32  ;;  %v425_v27 = vpop.f32.mrb[7].mxu1 }
 0x1ce   : > { %v437_v24 = vmax.f32 %v369_v10, 0.0  ;;  %v373_v26 = vadd.f32 %v372_v21, %v313_v32  ;;  %v439_v29 = vmax.f32 %v422_v17, 0.0  ;;  %v426_v33 = vadd.f32 %v425_v27, %v313_v32  ;;  %v515_v4 = vpop.permute.xlu1 %514 }
 0x1cf   : > { %v468_v28 = vmul.f32 %v454_v23, %v436_v16  ;;  %v440_v31 = vmax.f32 %v371_v19, 0.0  ;;  %v470_v34 = vmul.f32 %v454_v23, %v438_v22  ;;  %v442_v36 = vmax.f32 %v424_v25, 0.0 }
 0x1d0   : > { %v469_v35 = vmul.f32 %v454_v23, %v437_v24  ;;  %v441_v38 = vmax.f32 %v373_v26, 0.0  ;;  %v471_v30 = vmul.f32 %v454_v23, %v439_v29  ;;  %v443_v40 = vmax.f32 %v426_v33, 0.0 }
 0x1d1   : > { %v472_v39 = vmul.f32 %v458_v37, %v440_v31  ;;  %v477_v6 = vadd.f32 %v476_v1, %v468_v28  ;;  %v474_v42 = vmul.f32 %v458_v37, %v442_v36  ;;  %v495_v7 = vadd.f32 %v494_v5, %v470_v34 }
 0x1d2   : > { %v486_v41 = vadd.f32 %v485_v11, %v469_v35  ;;  %v473_v43 = vmul.f32 %v458_v37, %v441_v38  ;;  %v504_v44 = vadd.f32 %v503_v18, %v471_v30  ;;  %v475_v8 = vmul.f32 %v458_v37, %v443_v40 }
 0x1d3   : > { %v478_v45 = vadd.f32 %v477_v6, %v472_v39  ;;  %v496_v46 = vadd.f32 %v495_v7, %v474_v42  ;;  %v889_v58 = vmov 1966171168  }
 0x1d4   : > { %v487_v47 = vadd.f32 %v486_v41, %v473_v43  ;;  %v505_v32 = vadd.f32 %v504_v44, %v475_v8  ;;  %v528_v59 = vunpack.c.l.s4 %v889_v58 }
 0x1d5   : > { %v479_v48 = vrot.slane %v478_v45, 4  ;;  %v497_v49 = vrot.slane %v496_v46, 4 }
 0x1d6   : > { %v488_v50 = vrot.slane %v487_v47, 4  ;;  %v506_v52 = vrot.slane %v505_v32, 4  ;;  %v529_v3 = vunpack.c.0.s8 %v528_v59 }
 0x1d7   : > { %v480_v51 = vadd.f32 %v479_v48, %v478_v45  ;;  %v498_v53 = vadd.f32 %v497_v49, %v496_v46 }
 0x1d8   : > { %v489_v54 = vadd.f32 %v488_v50, %v487_v47  ;;  %v507_v55 = vadd.f32 %v506_v52, %v505_v32  ;;  %v532_v18 = vsub.s32 %v529_v3, %v1065_v14 }
 0x1d9   : > { %v481_v56 = vrot.slane %v480_v51, 2  ;;  %v499_v60 = vrot.slane %v498_v53, 2 }
 0x1da   : > { %v490_v57 = vrot.slane %v489_v54, 2  ;;  %v508_v61 = vrot.slane %v507_v55, 2 }
 0x1db   : > { %v482_v62 = vadd.f32 %v481_v56, %v480_v51  ;;  %v500_v0 = vadd.f32 %v499_v60, %v498_v53 }
 0x1dc   : > { %v491_v63 = vadd.f32 %v490_v57, %v489_v54  ;;  %v509_v2 = vadd.f32 %v508_v61, %v507_v55 }
 0x1dd   : > { %v483_v1 = vrot.slane %v482_v62, 1  ;;  %v501_v9 = vrot.slane %v500_v0, 1 }
 0x1de   : > { %v492_v5 = vrot.slane %v491_v63, 1  ;;  %v510_v11 = vrot.slane %v509_v2, 1 }
 0x1df   : > { %v484_v10 = vadd.f32 %v483_v1, %v482_v62  ;;  %v502_v15 = vadd.f32 %v501_v9, %v500_v0 }
 0x1e0   : > { %v493_v12 = vadd.f32 %v492_v5, %v491_v63  ;;  %v511_v16 = vadd.f32 %v510_v11, %v509_v2 }
 0x1e1   : > { %v517_v17 = vadd.f32 %v515_v4, %v484_v10  ;;  %v519_v20 = vadd.f32 %v515_v4, %v502_v15 }
 0x1e2   : > { %v518_v19 = vadd.f32 %v515_v4, %v493_v12  ;;  %v520_v21 = vadd.f32 %v515_v4, %v511_v16 }
 0x1e4   : > { %v525_v22 = vcombine.low %v517_v17, %v518_v19  ;;  %v526_v23 = vcombine.low %v519_v20, %v520_v21 }
 0x1e6   : > { %v533_v24 = vrot.slane %v525_v22, %v532_v18  ;;  %v540_v25 = vrot.slane %v526_v23, %v532_v18 }
 0x1e8   : > { %v541_v26 = vcombine.low %v533_v24, %v540_v25 }
 0x1ea   : > { %v548_v27 = vrot.slane %v541_v26, %v532_v18 }
 0x1ec   : > { %554 = vst.msk [vmem:[%s174_s17] sm:$0xf] %vm552_vm1, %v548_v27 }
 0x1ed   : > { %820 = shalt.err (!%p817_p7)
}
 0x1ee   : > { %s821_s6 = scalar_lea.hbm %s1086_s28, 64  ;;  %s825_s24 = scalar_lea.hbm %s1132_s2, 128 }
 0x1ef   : > { %p822_p9 = scmp.ne.s32.totalorder %s1086_s28, %s821_s6  ;;  %p826_p0 = scmp.lt.u32.totalorder %s1086_s28, %s1132_s2 }
 0x1f0   : > { %p827_p11 = scmp.lt.u32.totalorder %s825_s24, %s821_s6  ;;  %p829_p4 = scmp.lt.u32.totalorder %s821_s6, %s1086_s28 }
 0x1f1   : > { %p823_p2 = pnand %p822_p9, %p997_p12 }
 0x1f2   : > { %p828_p1 = por %p827_p11, %p826_p0 }
 0x1f3   : > { %p824_p5 = pneg %p823_p2 }
 0x1f4   : > { %p830_p6 = por %p829_p4, %p828_p1 }
 0x1f6   : > { %p831_p8 = pnand %p830_p6, %p824_p5 }
 0x1f8   : > { %834 = shalt.err (!%p831_p8)
}
 0x1f9   : > { %678 = dma.vmem_to_hbm [thread:$0]  (%p997_p12), %s1088_s27, 64, %s1086_s28, %s556_s30  }
 0x1fa PF: > { %s582_s26 = sand.u32 1, %s865_s9   ;;  %p1147_p10 = scmp.ne.s32.totalorder %s1137_s16, 0 }
 0x1fb   : > { %p1148_p13 = scmp.ge.s32.totalorder %s877_s12, 2  ;;  %s583_s19 = scalar_lea.sflag [#allocation4], %s582_s26 }
 0x1fd   : > { %p689_p3 = pnand %p1148_p13, %p1147_p10 }
 0x1ff   : > { %860 = dma.done.wait (!%p689_p3), %s583_s19, 64  }
 0x200   : > { %862 = vsyncadd (!%p689_p3), %s583_s19, 4294967232  ;;  %p16_p7 = scmp.ge.s32.totalorder %s962_s21, 4   ;;  %s1149_s9 = smov %s869_s10 }
 0x201   : > { %s1150_s10 = smov %s873_s11  ;;  %s1151_s11 = smov %s993_s8 }
 0x202   : > { %s1152_s12 = smov %s962_s21  ;;  %18 = sbr.rel (!%p16_p7) target bundleno = 6 (0x6), region = 77 }
 0x209   :  { %588 = vsyncpa [#allocation3], 1 }
 0x20a   :  { %590 = vsyncpa [#allocation3 + $0x1], 1 }
 0x20b   :  { %591 = vsyncpa [#allocation6], 1 }
 0x20c   :  { %592 = vsyncpa [#allocation4], 1 }
 0x20d   :  { %594 = vsyncpa [#allocation4 + $0x1], 1 }

</bundles_post_ra>
